<compile_context>
chip_gen: v5e
topology: v5e:2x2
jax: 0.10.0
libtpu: 0.0.40
codegen_flags: <defaults>
</compile_context>

<pallas_src>
import jax
import jax.numpy as jnp
from jax.experimental import pallas as pl
from jax.experimental.pallas import tpu as pltpu


def _head_kernel(x_ref, w1_ref, b1_ref, w2_ref, b2_ref, o_ref):
    # x_ref : [TILE_B, H]         (CLS rows, sublane-major)
    # w1_ref: [H, H]   b1_ref: [1, H]
    # w2_ref: [H, Lp]  b2_ref: [1, Lp]   (Lp = num_labels padded to 128 lanes)
    # o_ref : [TILE_B, Lp]
    x = x_ref[...]

    # dense + ReLU (dropout == identity in eval); f32 accumulation on the MXU.
    h = jnp.dot(x, w1_ref[...], preferred_element_type=jnp.float32) + b1_ref[...]
    h = jnp.maximum(h, 0.0)

    # out_proj: cast activations back to the weight dtype so bf16/int8 weights
    # use the native low-precision MXU path (no f32-emulated multi-pass).
    y = jnp.dot(h.astype(w2_ref.dtype), w2_ref[...],
                preferred_element_type=jnp.float32) + b2_ref[...]
    o_ref[...] = y.astype(o_ref.dtype)


def _round_up(a, m):
    return ((a + m - 1) // m) * m


def prepare_head_params(w_dense, b_dense, w_out, b_out):
    """One-time parameter prep, hoisted out of the per-call path.

    Pads num_labels up to a multiple of 128 so the kernel's second matmul and
    its output stores are lane-dense (unmasked full-width vst), and reshapes
    the biases to 2-D rows.  Returns (params_tuple, num_labels).
    """
    H = w_dense.shape[0]
    L = w_out.shape[1]
    L_pad = _round_up(L, 128)
    if L_pad != L:
        w_out = jnp.pad(w_out, ((0, 0), (0, L_pad - L)))
        b_out = jnp.pad(b_out, ((0, L_pad - L),))
    params = (w_dense, b_dense.reshape(1, H), w_out, b_out.reshape(1, L_pad))
    return params, L


def roberta_regression_head(features, w_dense, b_dense2d, w_out_p, b_out2d,
                            *, num_labels, tile_b=512):
    """features: [B, S, H].  Params come from prepare_head_params():
    w_dense [H, H] ([in, out]), b_dense2d [1, H],
    w_out_p [H, L_pad] (zero-padded to 128 lanes), b_out2d [1, L_pad].
    Returns [B, num_labels] in features.dtype.
    """
    B, S, H = features.shape
    L_pad = w_out_p.shape[1]
    out_dtype = features.dtype
    x_itemsize = jnp.dtype(out_dtype).itemsize
    w_itemsize = jnp.dtype(w_dense.dtype).itemsize

    # CLS slice in the wrapper: a cheap [B, H] strided read instead of padding
    # (and re-writing) the whole [B, S, H] tensor in HBM.
    x = features[:, 0, :]

    # Sublane multiple is dtype dependent (packed rows per sublane).
    sub = max(8, 32 // max(1, x_itemsize))
    # Fat tiles amortise per-grid-step overhead, but keep >= 2 grid steps when
    # B allows so both v7x TensorCores get work under "parallel" semantics.
    tile_b = min(max(tile_b, sub), _round_up(pl.cdiv(B, 2), sub))
    B_pad = _round_up(B, tile_b)
    if B_pad != B:
        x = jnp.pad(x, ((0, B_pad - B), (0, 0)))   # tiny pad of [B, H] only

    grid = (B_pad // tile_b,)

    # Raise the scoped-VMEM limit only if the resident weights plus the
    # double-buffered x/out tiles would exceed v5e's 16 MiB default.
    vmem_need = (2 * tile_b * (H + L_pad) * x_itemsize
                 + 2 * (H * H + H + H * L_pad + L_pad) * w_itemsize)
    cp_kwargs = dict(dimension_semantics=("parallel",))
    if vmem_need > 12 * 1024 * 1024:
        cp_kwargs["vmem_limit_bytes"] = int(min(2 * vmem_need, 64 * 1024 * 1024))

    out = pl.pallas_call(
        _head_kernel,
        out_shape=jax.ShapeDtypeStruct((B_pad, L_pad), out_dtype),
        grid=grid,
        in_specs=[
            # Batch tile of CLS rows, pipelined over the grid.
            pl.BlockSpec((tile_b, H), lambda i: (i, 0)),
            # Weights / biases: same block every grid step -> stay VMEM
            # resident.  (pipeline_mode=pl.Buffered(1) would also drop their
            # redundant second buffer on v5e; left at default for broad
            # jax-version compatibility since the footprint already fits.)
            pl.BlockSpec((H, H), lambda i: (0, 0)),
            pl.BlockSpec((1, H), lambda i: (0, 0)),
            pl.BlockSpec((H, L_pad), lambda i: (0, 0)),
            pl.BlockSpec((1, L_pad), lambda i: (0, 0)),
        ],
        out_specs=pl.BlockSpec((tile_b, L_pad), lambda i: (i, 0)),
        compiler_params=pltpu.CompilerParams(**cp_kwargs),
        cost_estimate=pl.CostEstimate(
            flops=2 * B_pad * H * (H + L_pad),
            transcendentals=0,
            bytes_accessed=(B_pad * (H + L_pad) * x_itemsize
                            + (H * H + H + H * L_pad + L_pad) * w_itemsize),
        ),
    )(x, w_dense, b_dense2d, w_out_p, b_out2d)

    # Crop batch padding and the zero-padded label lanes.
    return out[:B, :num_labels]


def _reference(features, w_dense, b_dense, w_out, b_out):
    x = features[:, 0, :]
    h = jnp.maximum(x @ w_dense + b_dense, 0.0)
    return h @ w_out + b_out


if __name__ == "__main__":
    # config: hidden_size=32, num_labels=1 (regression head), batch=2, seq=8
    B, S, H, L = 2, 8, 32, 1

    key = jax.random.PRNGKey(0)
    k1, k2, k3, k4, k5 = jax.random.split(key, 5)

    features = jax.random.normal(k1, (B, S, H), dtype=jnp.float32)
    # nn.Linear stores weight as [out, in]; we keep [in, out] for x @ W.
    w_dense = jax.random.normal(k2, (H, H), dtype=jnp.float32) * 0.05
    b_dense = jax.random.normal(k3, (H,), dtype=jnp.float32) * 0.05
    w_out = jax.random.normal(k4, (H, L), dtype=jnp.float32) * 0.05
    b_out = jax.random.normal(k5, (L,), dtype=jnp.float32) * 0.05

    # One-time param prep (padding / bias reshape hoisted out of the call path).
    params, num_labels = prepare_head_params(w_dense, b_dense, w_out, b_out)

    out = roberta_regression_head(features, *params, num_labels=num_labels)
    out = jax.block_until_ready(out)

    ref = _reference(features, w_dense, b_dense, w_out, b_out)
    assert out.shape == (B, L), out.shape
    assert jnp.allclose(out, ref, atol=1e-5, rtol=1e-5), "mismatch vs reference"

    print("KERNEL_OK")
</pallas_src>

<mosaic_0001>
module attributes {stable_mosaic.version = 11 : i64} {
  func.func @_head_kernel(%arg0: i32, %arg1: memref<8x32xf32, #tpu.memory_space<vmem>>, %arg2: memref<32x32xf32, #tpu.memory_space<vmem>>, %arg3: memref<1x32xf32, #tpu.memory_space<vmem>>, %arg4: memref<32x128xf32, #tpu.memory_space<vmem>>, %arg5: memref<1x128xf32, #tpu.memory_space<vmem>>, %arg6: memref<8x128xf32, #tpu.memory_space<vmem>>) attributes {dimension_semantics = [#tpu.dimension_semantics<parallel>], iteration_bounds = array<i64: 1>, scalar_prefetch = 0 : i64, scratch_operands = 0 : i64, tpu.core_type = #tpu.core_type<tc>, window_params = [{transform_indices = @transform_0, window_bounds = array<i64: 8, 32>}, {pipeline_mode = #tpu.pipeline_mode<synchronous>, transform_indices = @transform_1, window_bounds = array<i64: 32, 32>}, {pipeline_mode = #tpu.pipeline_mode<synchronous>, transform_indices = @transform_2, window_bounds = array<i64: 1, 32>}, {pipeline_mode = #tpu.pipeline_mode<synchronous>, transform_indices = @transform_3, window_bounds = array<i64: 32, 128>}, {pipeline_mode = #tpu.pipeline_mode<synchronous>, transform_indices = @transform_4, window_bounds = array<i64: 1, 128>}, {transform_indices = @transform_5, window_bounds = array<i64: 8, 128>}]} {
    %c0 = arith.constant 0 : index
    %c0_0 = arith.constant 0 : index
    %0 = vector.load %arg1[%c0, %c0_0] : memref<8x32xf32, #tpu.memory_space<vmem>>, vector<8x32xf32>
    %c0_1 = arith.constant 0 : index
    %c0_2 = arith.constant 0 : index
    %1 = vector.load %arg2[%c0_1, %c0_2] : memref<32x32xf32, #tpu.memory_space<vmem>>, vector<32x32xf32>
    %cst = arith.constant dense<0.000000e+00> : vector<8x32xf32>
    %2 = tpu.matmul %0, %1, %cst {dimension_numbers = #tpu.dot_dimension_numbers<[1], [0], [0], [1], [0, 0, 1, 1], [], []>} : vector<8x32xf32>, vector<32x32xf32>, vector<8x32xf32> -> vector<8x32xf32>
    %c0_3 = arith.constant 0 : index
    %c0_4 = arith.constant 0 : index
    %3 = vector.load %arg3[%c0_3, %c0_4] : memref<1x32xf32, #tpu.memory_space<vmem>>, vector<1x32xf32>
    %4 = vector.broadcast %3 : vector<1x32xf32> to vector<8x32xf32>
    %5 = arith.addf %2, %4 : vector<8x32xf32>
    %cst_5 = arith.constant 0.000000e+00 : f32
    %6 = vector.broadcast %cst_5 : f32 to vector<8x32xf32>
    %7 = arith.maximumf %5, %6 : vector<8x32xf32>
    %c0_6 = arith.constant 0 : index
    %c0_7 = arith.constant 0 : index
    %8 = vector.load %arg4[%c0_6, %c0_7] : memref<32x128xf32, #tpu.memory_space<vmem>>, vector<32x128xf32>
    %cst_8 = arith.constant dense<0.000000e+00> : vector<8x128xf32>
    %9 = tpu.matmul %7, %8, %cst_8 {dimension_numbers = #tpu.dot_dimension_numbers<[1], [0], [0], [1], [0, 0, 1, 1], [], []>} : vector<8x32xf32>, vector<32x128xf32>, vector<8x128xf32> -> vector<8x128xf32>
    %c0_9 = arith.constant 0 : index
    %c0_10 = arith.constant 0 : index
    %10 = vector.load %arg5[%c0_9, %c0_10] : memref<1x128xf32, #tpu.memory_space<vmem>>, vector<1x128xf32>
    %11 = vector.broadcast %10 : vector<1x128xf32> to vector<8x128xf32>
    %12 = arith.addf %9, %11 : vector<8x128xf32>
    %c0_11 = arith.constant 0 : index
    %c0_12 = arith.constant 0 : index
    %13 = vector.load %arg6[%c0_11, %c0_12] : memref<8x128xf32, #tpu.memory_space<vmem>>, vector<8x128xf32>
    tpu.vector_store %arg6[%c0_11, %c0_12], %12 {strides = array<i32>} : memref<8x128xf32, #tpu.memory_space<vmem>>, vector<8x128xf32>,
    return
  }
  func.func @transform_0(%arg0: i32) -> (i32, i32) {
    %c0_i32 = arith.constant 0 : i32
    %c0_i32_0 = arith.constant 0 : i32
    return %arg0, %c0_i32 : i32, i32
  }
  func.func @transform_1(%arg0: i32) -> (i32, i32) {
    %c0_i32 = arith.constant 0 : i32
    %c0_i32_0 = arith.constant 0 : i32
    %c0_i32_1 = arith.constant 0 : i32
    return %c0_i32, %c0_i32_0 : i32, i32
  }
  func.func @transform_2(%arg0: i32) -> (i32, i32) {
    %c0_i32 = arith.constant 0 : i32
    %c0_i32_0 = arith.constant 0 : i32
    %c0_i32_1 = arith.constant 0 : i32
    return %c0_i32, %c0_i32_0 : i32, i32
  }
  func.func @transform_3(%arg0: i32) -> (i32, i32) {
    %c0_i32 = arith.constant 0 : i32
    %c0_i32_0 = arith.constant 0 : i32
    %c0_i32_1 = arith.constant 0 : i32
    return %c0_i32, %c0_i32_0 : i32, i32
  }
  func.func @transform_4(%arg0: i32) -> (i32, i32) {
    %c0_i32 = arith.constant 0 : i32
    %c0_i32_0 = arith.constant 0 : i32
    %c0_i32_1 = arith.constant 0 : i32
    return %c0_i32, %c0_i32_0 : i32, i32
  }
  func.func @transform_5(%arg0: i32) -> (i32, i32) {
    %c0_i32 = arith.constant 0 : i32
    %c0_i32_0 = arith.constant 0 : i32
    return %arg0, %c0_i32 : i32, i32
  }
}

</mosaic_0001>

<bundles_post_ra>
// kernel: tpu_custom_call.1
= control target key start
LH: loop header
LB: loop body
LE: loop exit
PB: predicated region body
PF: predicated region fallthrough
CT: control target
= control target key end

     0   :  { %10 = vsyncpa [#allocation3], 0  ;;  %s316_s0 = inlined_call_operand.hbm [shape: f32[8,32], index: 0, kind: input, shape index: {}]   ;;  %s317_s1 = inlined_call_operand.hbm [shape: f32[32,32], index: 1, kind: input, shape index: {}]   ;;  %s318_s2 = inlined_call_operand.vmem [shape: f32[1,32], index: 2, kind: input, shape index: {}]   ;;  %s319_s3 = inlined_call_operand.hbm [shape: f32[32,128], index: 3, kind: input, shape index: {}]   ;;  %s320_s4 = inlined_call_operand.vmem [shape: f32[1,128], index: 4, kind: input, shape index: {}]   ;;  %s321_s5 = inlined_call_operand.hbm [shape: f32[8,128], index: 5, kind: output, shape index: {}]  }
   0x1   :  { %11 = vsyncpa [#allocation6], 0  ;;  %s28_s20 = sshll.u32 %s317_s1, 4  ;;  %s29_s20 = int_to_ptr.hbm [resolvable:$true] %s28_s20 }
   0x2   :  { %12 = vsyncpa [#allocation4], 0  ;;  %s262_s21 = smov [#allocation5]   ;;  %s18_s25 = sshll.u32 %s316_s0, 4  ;;  %s19_s25 = int_to_ptr.hbm [resolvable:$true] %s18_s25 }
   0x3   :  { %s30_s22 = sshll.u32 %s262_s21, 4  ;;  %s263_s26 = smov 128   ;;  %s31_s22 = int_to_ptr.vmem [resolvable:$true] %s30_s22 }
   0x4   :  { %s264_s27 = smov 8   ;;  %s265_s28 = smov [#allocation2]  }
   0x5   :  { %36 = dma.hbm_to_vmem [thread:$0]  %s29_s20, 512, %s31_s22, [#allocation6], %s263_s26, %s263_s26, %s264_s27  }
   0x6   :  { %s20_s29 = sshll.u32 %s265_s28, 4  ;;  %s43_s7 = sshll.u32 %s319_s3, 4  ;;  %s21_s29 = int_to_ptr.vmem [resolvable:$true] %s20_s29  ;;  %s44_s7 = int_to_ptr.hbm [resolvable:$true] %s43_s7 }
   0x7   :  { %23 = dma.hbm_to_vmem [thread:$0]  %s19_s25, 128, %s21_s29, [#allocation3]  }
   0x8   :  { %s266_s1 = smov [#allocation7]  }
   0x9   :  { %s45_s8 = sshll.u32 %s266_s1, 4  ;;  %s46_s8 = int_to_ptr.vmem [resolvable:$true] %s45_s8 }
   0xa   :  { %51 = dma.hbm_to_vmem [thread:$0]  %s44_s7, 512, %s46_s8, [#allocation6], %s263_s26, %s263_s26, %s264_s27  }
   0xb   :  { %256 = dma.done.wait [#allocation3], 128  }
   0xc   :  { %257 = vsyncadd [#allocation3], 4294967168 }
   0xd   :  { %258 = dma.done.wait [#allocation6], 1024  }
   0xe   :  { %259 = vsyncadd [#allocation6], 4294966272  ;;  %v70_v0 = vld [vmem:[#allocation5 + $0x18] sm:$0xff]  ;;  %v69_v1 = vld [vmem:[#allocation5 + $0x10] sm:$0xff]  ;;  %vm75_vm0 = vcmask 261120   ;;  %s267_s11 = smov [#allocation8]  }
   0xf   :  { %91 = vmatpush.msra.mxu0 %v70_v0  ;;  %v103_v2 = vld [vmem:[#allocation7 + $0x18] sm:$0xff]  ;;  %v68_v3 = vld [vmem:[#allocation5 + $0x8] sm:$0xff]  ;;  %v67_v4 = vld [vmem:[#allocation5] sm:$0xff]  ;;  %s137_s12 = sshll.u32 %s267_s11, 4  ;;  %s139_s15 = sshll.u32 %s321_s5, 4  ;;  %s138_s12 = int_to_ptr.vmem [resolvable:$true] %s137_s12  ;;  %s140_s15 = int_to_ptr.hbm [resolvable:$true] %s139_s15 }
  0x10   :  { %123 = vmatpush.msra.mxu1 %v103_v2  ;;  %v66_v5 = vld [vmem:[#allocation2] sm:$0xff]  ;;  %v102_v6 = vld [vmem:[#allocation7 + $0x10] sm:$0xff]  ;;  %v101_v7 = vld [vmem:[#allocation7 + $0x8] sm:$0xff] }
  0x11   :  { %92 = vmatpush.msra.mxu0 %v69_v1  ;;  %v100_v8 = vld [vmem:[#allocation7] sm:$0xff]  ;;  %v158_v9 = vld [vmem:[%s318_s2] ss:$0 sm:$0xff] }
  0x12   :  { %124 = vmatpush.msra.mxu1 %v102_v6  ;;  %v159_v13 = vld [vmem:[%s320_s4] ss:$0 sm:$0xff] }
  0x13   :  { %93 = vmatpush.msra.mxu0 %v68_v3 }
  0x14   :  { %125 = vmatpush.msra.mxu1 %v101_v7 }
  0x15   :  { %94 = vmatpush.msra.mxu0 %v67_v4 }
  0x16   :  { %150 = vmatmul.msk.f32.vlgmr.msra.gmra.mxu0 %vm75_vm0, %v66_v5  ;;  %126 = vmatpush.msra.mxu1 %v100_v8 }
  0x93   :  { %v96_v10 = vpop.f32.mrf.mxu0 }
  0x94   :  { %v97_v11 = vadd.f32 %v158_v9, %v96_v10 }
  0x96   :  { %v99_v12 = vmax.f32 %v97_v11, 0.0 }
  0x98   :  { %151 = vmatmul.msk.f32.vlgmr.msra.gmra.mxu1 %vm75_vm0, %v99_v12 }
 0x115   :  { %v128_v14 = vpop.f32.mrf.mxu1 }
 0x116   :  { %v129_v15 = vadd.f32 %v159_v13, %v128_v14 }
 0x118   :  { %131 = vst [vmem:[#allocation8] sm:$0xff] %v129_v15 }
 0x119   :  { %142 = dma.vmem_to_hbm [thread:$0]  %s138_s12, 128, %s140_s15, [#allocation4]  }
 0x11a   :  { %260 = dma.done.wait [#allocation4], 128  }
 0x11b   :  { %261 = vsyncadd [#allocation4], 4294967168 }
 0x11c   :  { %147 = vsyncpa [#allocation3], 1 }
 0x11d   :  { %148 = vsyncpa [#allocation6], 1 }
 0x11e   :  { %149 = vsyncpa [#allocation4], 1 }

</bundles_post_ra>
